<compile_context>
chip_gen: v7x
topology: tpu7x:2x2x1
jax: 0.10.0
libtpu: 0.0.40
codegen_flags: <defaults>
</compile_context>

<pallas_src>
import functools

import jax
import jax.numpy as jnp
from jax import lax
from jax.experimental import pallas as pl
from jax.experimental.pallas import tpu as pltpu


def _round_up(x, m):
    return ((x + m - 1) // m) * m


def tiny_transformer_kernel(idx_ref, emb_hbm, w_ref, b_ref, out_ref,
                            x_vmem, gather_sem):
    """One (seq_block i, vocab_block j) grid step.

    idx_ref    : (S_pad,) int32 in SMEM (scalar prefetch)
    emb_hbm    : (V, D) f32 in HBM (manual DMA gather)
    w_ref      : (tN, D) f32 VMEM tile of the fc weight (rows = vocab)
    b_ref      : (1, tN) f32 VMEM tile of the fc bias
    out_ref    : (tS, tN) f32 output tile
    x_vmem     : (tS, D) f32 scratch holding gathered embedding rows
    gather_sem : (tS,) DMA semaphores
    """
    i = pl.program_id(0)
    j = pl.program_id(1)
    ts, _ = x_vmem.shape

    # DMA-gather this sequence block's embedding rows once per i-block.
    # j is the inner "arbitrary" axis, so j == 0 runs first for every i on
    # each core; the gather is amortized over all vocab tiles of the block.
    @pl.when(j == 0)
    def _gather():
        copies = []
        for s in range(ts):                      # static unroll; ts is small
            tok = idx_ref[i * ts + s]
            cp = pltpu.make_async_copy(
                emb_hbm.at[pl.ds(tok, 1), :],    # one (1, D) row from HBM
                x_vmem.at[pl.ds(s, 1), :],
                gather_sem.at[s],
            )
            cp.start()                            # issue all rows first ...
            copies.append(cp)
        for cp in copies:                         # ... then wait (overlapped)
            cp.wait()

    # (tS, D) . (tN, D) contracted on D -> (tS, tN); f32 accumulation on MXU.
    # (No transposed weight copy needed in the wrapper.)
    y = lax.dot_general(
        x_vmem[...], w_ref[...],
        dimension_numbers=(((1,), (1,)), ((), ())),
        preferred_element_type=jnp.float32,
    )
    out_ref[...] = y + b_ref[...]                 # bias broadcast over rows


@functools.partial(jax.jit, static_argnames=("ts", "tn"))
def tiny_transformer(idx, emb, w, b, *, ts=8, tn=128):
    """idx: (S,) int, emb: (V, D), w: (V, D) [torch Linear weight], b: (V,)."""
    S = idx.shape[0]
    V, D = emb.shape

    s_pad = _round_up(S, ts)          # sublane-aligned seq tiles
    v_pad = _round_up(V, tn)          # lane-dense (multiple-of-128) vocab tiles

    # Padded indices gather row 0; padded rows/cols are sliced off at the end.
    idx_pad = jnp.zeros((s_pad,), jnp.int32).at[:S].set(idx.astype(jnp.int32))
    w_pad = jnp.zeros((v_pad, D), w.dtype).at[:V, :].set(w)
    b_pad = jnp.zeros((1, v_pad), b.dtype).at[0, :V].set(b)

    grid = (s_pad // ts, v_pad // tn)

    out_pad = pl.pallas_call(
        tiny_transformer_kernel,
        out_shape=jax.ShapeDtypeStruct((s_pad, v_pad), jnp.float32),
        grid_spec=pltpu.PrefetchScalarGridSpec(
            num_scalar_prefetch=1,                           # idx -> SMEM
            grid=grid,
            in_specs=[
                pl.BlockSpec(memory_space=pl.ANY),           # emb stays in HBM
                pl.BlockSpec((tn, D), lambda i, j, idx_sref: (j, 0)),  # fc W tile
                pl.BlockSpec((1, tn), lambda i, j, idx_sref: (0, j)),  # fc b tile
            ],
            out_specs=pl.BlockSpec((ts, tn), lambda i, j, idx_sref: (i, j)),
            scratch_shapes=[
                pltpu.VMEM((ts, D), jnp.float32),            # gathered x_embed
                pltpu.SemaphoreType.DMA((ts,)),
            ],
        ),
        compiler_params=pltpu.CompilerParams(
            # seq blocks are independent ("parallel" -> megacore sharding on
            # v7x); vocab axis is "arbitrary" so the j==0 gather guard holds.
            dimension_semantics=("parallel", "arbitrary"),
            vmem_limit_bytes=32 * 1024 * 1024,
        ),
    )(idx_pad, emb, w_pad, b_pad)

    return out_pad[:S, :V]


if __name__ == "__main__":
    embedding_dim = 16
    vocab = sorted(set("hello world"))
    vocab_size = len(vocab)                       # 8
    char_to_idx = {ch: i for i, ch in enumerate(vocab)}

    corpus = "hello"
    encoded = jnp.array([char_to_idx[ch] for ch in corpus], dtype=jnp.int32)
    x = encoded[:-1]                              # (4,)

    # Deterministic parameter init (shapes match nn.Embedding / nn.Linear).
    key = jax.random.PRNGKey(0)
    k_emb, k_w, k_b = jax.random.split(key, 3)
    emb = jax.random.normal(k_emb, (vocab_size, embedding_dim), dtype=jnp.float32)
    w = jax.random.normal(k_w, (vocab_size, embedding_dim), dtype=jnp.float32) * 0.1
    b = jax.random.normal(k_b, (vocab_size,), dtype=jnp.float32) * 0.1

    out = tiny_transformer(x, emb, w, b)
    out = jax.block_until_ready(out)

    # Pure-JAX reference (nn.Embedding -> nn.Linear in f32).
    ref = emb[x] @ w.T + b
    assert out.shape == (x.shape[0], vocab_size)
    assert jnp.allclose(out, ref, atol=1e-5), "mismatch vs reference"

    print("KERNEL_OK")
</pallas_src>

<mosaic_0001>
module attributes {stable_mosaic.version = 11 : i64} {
  func.func @tiny_transformer_kernel(%arg0: i32, %arg1: i32, %arg2: memref<8xi32, #tpu.memory_space<smem>>, %arg3: memref<8x16xf32, #tpu.memory_space<any>>, %arg4: memref<128x16xf32, #tpu.memory_space<vmem>>, %arg5: memref<1x128xf32, #tpu.memory_space<vmem>>, %arg6: memref<8x128xf32, #tpu.memory_space<vmem>>, %arg7: memref<8x16xf32, #tpu.memory_space<vmem>>, %arg8: memref<8x!tpu.dma_semaphore, #tpu.memory_space<semaphore_mem>>) attributes {dimension_semantics = [#tpu.dimension_semantics<parallel>, #tpu.dimension_semantics<arbitrary>], iteration_bounds = array<i64: 1, 1>, scalar_prefetch = 1 : i64, scratch_operands = 2 : i64, tpu.core_type = #tpu.core_type<tc>, window_params = [{}, {transform_indices = @transform_1, window_bounds = array<i64: 128, 16>}, {transform_indices = @transform_2, window_bounds = array<i64: 1, 128>}, {transform_indices = @transform_3, window_bounds = array<i64: 8, 128>}]} {
    %c0_i32 = arith.constant 0 : i32
    %0 = arith.cmpi eq, %arg1, %c0_i32 : i32
    %1 = arith.extui %0 : i1 to i32
    %c0_i32_0 = arith.constant 0 : i32
    %2 = arith.cmpi ne, %1, %c0_i32_0 : i32
    scf.if %2 {
      %c8_i32 = arith.constant 8 : i32
      %10 = arith.muli %arg0, %c8_i32 : i32
      %c0_i32_8 = arith.constant 0 : i32
      %11 = arith.addi %10, %c0_i32_8 : i32
      %12 = arith.index_cast %11 : i32 to index
      %13 = memref.load %arg2[%12] : memref<8xi32, #tpu.memory_space<smem>>
      %c0_i32_9 = arith.constant 0 : i32
      %c0_i32_10 = arith.constant 0 : i32
      %14 = tpu.memref_slice %arg3[%13, %c0_i32_10] : memref<8x16xf32, #tpu.memory_space<any>> -> memref<1x16xf32, #tpu.memory_space<any>>
      %c0_i32_11 = arith.constant 0 : i32
      %c0_i32_12 = arith.constant 0 : i32
      %15 = tpu.memref_slice %arg7[%c0_i32_11, %c0_i32_12] : memref<8x16xf32, #tpu.memory_space<vmem>> -> memref<1x16xf32, #tpu.memory_space<vmem>>
      %16 = tpu.memref_slice %arg8[%c0_i32_9] : memref<8x!tpu.dma_semaphore, #tpu.memory_space<semaphore_mem>> -> memref<1x!tpu.dma_semaphore, #tpu.memory_space<semaphore_mem>>
      %17 = tpu.memref_squeeze %16 : memref<1x!tpu.dma_semaphore, #tpu.memory_space<semaphore_mem>> -> memref<!tpu.dma_semaphore, #tpu.memory_space<semaphore_mem>>
      tpu.enqueue_dma source(%14 : memref<1x16xf32, #tpu.memory_space<any>>) target(%15 : memref<1x16xf32, #tpu.memory_space<vmem>>) target_semaphore(%17 : memref<!tpu.dma_semaphore, #tpu.memory_space<semaphore_mem>>)
      %c8_i32_13 = arith.constant 8 : i32
      %18 = arith.muli %arg0, %c8_i32_13 : i32
      %c1_i32 = arith.constant 1 : i32
      %19 = arith.addi %18, %c1_i32 : i32
      %20 = arith.index_cast %19 : i32 to index
      %21 = memref.load %arg2[%20] : memref<8xi32, #tpu.memory_space<smem>>
      %c1_i32_14 = arith.constant 1 : i32
      %c0_i32_15 = arith.constant 0 : i32
      %22 = tpu.memref_slice %arg3[%21, %c0_i32_15] : memref<8x16xf32, #tpu.memory_space<any>> -> memref<1x16xf32, #tpu.memory_space<any>>
      %c1_i32_16 = arith.constant 1 : i32
      %c0_i32_17 = arith.constant 0 : i32
      %23 = tpu.memref_slice %arg7[%c1_i32_16, %c0_i32_17] : memref<8x16xf32, #tpu.memory_space<vmem>> -> memref<1x16xf32, #tpu.memory_space<vmem>>
      %24 = tpu.memref_slice %arg8[%c1_i32_14] : memref<8x!tpu.dma_semaphore, #tpu.memory_space<semaphore_mem>> -> memref<1x!tpu.dma_semaphore, #tpu.memory_space<semaphore_mem>>
      %25 = tpu.memref_squeeze %24 : memref<1x!tpu.dma_semaphore, #tpu.memory_space<semaphore_mem>> -> memref<!tpu.dma_semaphore, #tpu.memory_space<semaphore_mem>>
      tpu.enqueue_dma source(%22 : memref<1x16xf32, #tpu.memory_space<any>>) target(%23 : memref<1x16xf32, #tpu.memory_space<vmem>>) target_semaphore(%25 : memref<!tpu.dma_semaphore, #tpu.memory_space<semaphore_mem>>)
      %c8_i32_18 = arith.constant 8 : i32
      %26 = arith.muli %arg0, %c8_i32_18 : i32
      %c2_i32 = arith.constant 2 : i32
      %27 = arith.addi %26, %c2_i32 : i32
      %28 = arith.index_cast %27 : i32 to index
      %29 = memref.load %arg2[%28] : memref<8xi32, #tpu.memory_space<smem>>
      %c2_i32_19 = arith.constant 2 : i32
      %c0_i32_20 = arith.constant 0 : i32
      %30 = tpu.memref_slice %arg3[%29, %c0_i32_20] : memref<8x16xf32, #tpu.memory_space<any>> -> memref<1x16xf32, #tpu.memory_space<any>>
      %c2_i32_21 = arith.constant 2 : i32
      %c0_i32_22 = arith.constant 0 : i32
      %31 = tpu.memref_slice %arg7[%c2_i32_21, %c0_i32_22] : memref<8x16xf32, #tpu.memory_space<vmem>> -> memref<1x16xf32, #tpu.memory_space<vmem>>
      %32 = tpu.memref_slice %arg8[%c2_i32_19] : memref<8x!tpu.dma_semaphore, #tpu.memory_space<semaphore_mem>> -> memref<1x!tpu.dma_semaphore, #tpu.memory_space<semaphore_mem>>
      %33 = tpu.memref_squeeze %32 : memref<1x!tpu.dma_semaphore, #tpu.memory_space<semaphore_mem>> -> memref<!tpu.dma_semaphore, #tpu.memory_space<semaphore_mem>>
      tpu.enqueue_dma source(%30 : memref<1x16xf32, #tpu.memory_space<any>>) target(%31 : memref<1x16xf32, #tpu.memory_space<vmem>>) target_semaphore(%33 : memref<!tpu.dma_semaphore, #tpu.memory_space<semaphore_mem>>)
      %c8_i32_23 = arith.constant 8 : i32
      %34 = arith.muli %arg0, %c8_i32_23 : i32
      %c3_i32 = arith.constant 3 : i32
      %35 = arith.addi %34, %c3_i32 : i32
      %36 = arith.index_cast %35 : i32 to index
      %37 = memref.load %arg2[%36] : memref<8xi32, #tpu.memory_space<smem>>
      %c3_i32_24 = arith.constant 3 : i32
      %c0_i32_25 = arith.constant 0 : i32
      %38 = tpu.memref_slice %arg3[%37, %c0_i32_25] : memref<8x16xf32, #tpu.memory_space<any>> -> memref<1x16xf32, #tpu.memory_space<any>>
      %c3_i32_26 = arith.constant 3 : i32
      %c0_i32_27 = arith.constant 0 : i32
      %39 = tpu.memref_slice %arg7[%c3_i32_26, %c0_i32_27] : memref<8x16xf32, #tpu.memory_space<vmem>> -> memref<1x16xf32, #tpu.memory_space<vmem>>
      %40 = tpu.memref_slice %arg8[%c3_i32_24] : memref<8x!tpu.dma_semaphore, #tpu.memory_space<semaphore_mem>> -> memref<1x!tpu.dma_semaphore, #tpu.memory_space<semaphore_mem>>
      %41 = tpu.memref_squeeze %40 : memref<1x!tpu.dma_semaphore, #tpu.memory_space<semaphore_mem>> -> memref<!tpu.dma_semaphore, #tpu.memory_space<semaphore_mem>>
      tpu.enqueue_dma source(%38 : memref<1x16xf32, #tpu.memory_space<any>>) target(%39 : memref<1x16xf32, #tpu.memory_space<vmem>>) target_semaphore(%41 : memref<!tpu.dma_semaphore, #tpu.memory_space<semaphore_mem>>)
      %c8_i32_28 = arith.constant 8 : i32
      %42 = arith.muli %arg0, %c8_i32_28 : i32
      %c4_i32 = arith.constant 4 : i32
      %43 = arith.addi %42, %c4_i32 : i32
      %44 = arith.index_cast %43 : i32 to index
      %45 = memref.load %arg2[%44] : memref<8xi32, #tpu.memory_space<smem>>
      %c4_i32_29 = arith.constant 4 : i32
      %c0_i32_30 = arith.constant 0 : i32
      %46 = tpu.memref_slice %arg3[%45, %c0_i32_30] : memref<8x16xf32, #tpu.memory_space<any>> -> memref<1x16xf32, #tpu.memory_space<any>>
      %c4_i32_31 = arith.constant 4 : i32
      %c0_i32_32 = arith.constant 0 : i32
      %47 = tpu.memref_slice %arg7[%c4_i32_31, %c0_i32_32] : memref<8x16xf32, #tpu.memory_space<vmem>> -> memref<1x16xf32, #tpu.memory_space<vmem>>
      %48 = tpu.memref_slice %arg8[%c4_i32_29] : memref<8x!tpu.dma_semaphore, #tpu.memory_space<semaphore_mem>> -> memref<1x!tpu.dma_semaphore, #tpu.memory_space<semaphore_mem>>
      %49 = tpu.memref_squeeze %48 : memref<1x!tpu.dma_semaphore, #tpu.memory_space<semaphore_mem>> -> memref<!tpu.dma_semaphore, #tpu.memory_space<semaphore_mem>>
      tpu.enqueue_dma source(%46 : memref<1x16xf32, #tpu.memory_space<any>>) target(%47 : memref<1x16xf32, #tpu.memory_space<vmem>>) target_semaphore(%49 : memref<!tpu.dma_semaphore, #tpu.memory_space<semaphore_mem>>)
      %c8_i32_33 = arith.constant 8 : i32
      %50 = arith.muli %arg0, %c8_i32_33 : i32
      %c5_i32 = arith.constant 5 : i32
      %51 = arith.addi %50, %c5_i32 : i32
      %52 = arith.index_cast %51 : i32 to index
      %53 = memref.load %arg2[%52] : memref<8xi32, #tpu.memory_space<smem>>
      %c5_i32_34 = arith.constant 5 : i32
      %c0_i32_35 = arith.constant 0 : i32
      %54 = tpu.memref_slice %arg3[%53, %c0_i32_35] : memref<8x16xf32, #tpu.memory_space<any>> -> memref<1x16xf32, #tpu.memory_space<any>>
      %c5_i32_36 = arith.constant 5 : i32
      %c0_i32_37 = arith.constant 0 : i32
      %55 = tpu.memref_slice %arg7[%c5_i32_36, %c0_i32_37] : memref<8x16xf32, #tpu.memory_space<vmem>> -> memref<1x16xf32, #tpu.memory_space<vmem>>
      %56 = tpu.memref_slice %arg8[%c5_i32_34] : memref<8x!tpu.dma_semaphore, #tpu.memory_space<semaphore_mem>> -> memref<1x!tpu.dma_semaphore, #tpu.memory_space<semaphore_mem>>
      %57 = tpu.memref_squeeze %56 : memref<1x!tpu.dma_semaphore, #tpu.memory_space<semaphore_mem>> -> memref<!tpu.dma_semaphore, #tpu.memory_space<semaphore_mem>>
      tpu.enqueue_dma source(%54 : memref<1x16xf32, #tpu.memory_space<any>>) target(%55 : memref<1x16xf32, #tpu.memory_space<vmem>>) target_semaphore(%57 : memref<!tpu.dma_semaphore, #tpu.memory_space<semaphore_mem>>)
      %c8_i32_38 = arith.constant 8 : i32
      %58 = arith.muli %arg0, %c8_i32_38 : i32
      %c6_i32 = arith.constant 6 : i32
      %59 = arith.addi %58, %c6_i32 : i32
      %60 = arith.index_cast %59 : i32 to index
      %61 = memref.load %arg2[%60] : memref<8xi32, #tpu.memory_space<smem>>
      %c6_i32_39 = arith.constant 6 : i32
      %c0_i32_40 = arith.constant 0 : i32
      %62 = tpu.memref_slice %arg3[%61, %c0_i32_40] : memref<8x16xf32, #tpu.memory_space<any>> -> memref<1x16xf32, #tpu.memory_space<any>>
      %c6_i32_41 = arith.constant 6 : i32
      %c0_i32_42 = arith.constant 0 : i32
      %63 = tpu.memref_slice %arg7[%c6_i32_41, %c0_i32_42] : memref<8x16xf32, #tpu.memory_space<vmem>> -> memref<1x16xf32, #tpu.memory_space<vmem>>
      %64 = tpu.memref_slice %arg8[%c6_i32_39] : memref<8x!tpu.dma_semaphore, #tpu.memory_space<semaphore_mem>> -> memref<1x!tpu.dma_semaphore, #tpu.memory_space<semaphore_mem>>
      %65 = tpu.memref_squeeze %64 : memref<1x!tpu.dma_semaphore, #tpu.memory_space<semaphore_mem>> -> memref<!tpu.dma_semaphore, #tpu.memory_space<semaphore_mem>>
      tpu.enqueue_dma source(%62 : memref<1x16xf32, #tpu.memory_space<any>>) target(%63 : memref<1x16xf32, #tpu.memory_space<vmem>>) target_semaphore(%65 : memref<!tpu.dma_semaphore, #tpu.memory_space<semaphore_mem>>)
      %c8_i32_43 = arith.constant 8 : i32
      %66 = arith.muli %arg0, %c8_i32_43 : i32
      %c7_i32 = arith.constant 7 : i32
      %67 = arith.addi %66, %c7_i32 : i32
      %68 = arith.index_cast %67 : i32 to index
      %69 = memref.load %arg2[%68] : memref<8xi32, #tpu.memory_space<smem>>
      %c7_i32_44 = arith.constant 7 : i32
      %c0_i32_45 = arith.constant 0 : i32
      %70 = tpu.memref_slice %arg3[%69, %c0_i32_45] : memref<8x16xf32, #tpu.memory_space<any>> -> memref<1x16xf32, #tpu.memory_space<any>>
      %c7_i32_46 = arith.constant 7 : i32
      %c0_i32_47 = arith.constant 0 : i32
      %71 = tpu.memref_slice %arg7[%c7_i32_46, %c0_i32_47] : memref<8x16xf32, #tpu.memory_space<vmem>> -> memref<1x16xf32, #tpu.memory_space<vmem>>
      %72 = tpu.memref_slice %arg8[%c7_i32_44] : memref<8x!tpu.dma_semaphore, #tpu.memory_space<semaphore_mem>> -> memref<1x!tpu.dma_semaphore, #tpu.memory_space<semaphore_mem>>
      %73 = tpu.memref_squeeze %72 : memref<1x!tpu.dma_semaphore, #tpu.memory_space<semaphore_mem>> -> memref<!tpu.dma_semaphore, #tpu.memory_space<semaphore_mem>>
      tpu.enqueue_dma source(%70 : memref<1x16xf32, #tpu.memory_space<any>>) target(%71 : memref<1x16xf32, #tpu.memory_space<vmem>>) target_semaphore(%73 : memref<!tpu.dma_semaphore, #tpu.memory_space<semaphore_mem>>)
      %c0_i32_48 = arith.constant 0 : i32
      %c0_i32_49 = arith.constant 0 : i32
      %74 = tpu.memref_slice %arg3[%13, %c0_i32_49] : memref<8x16xf32, #tpu.memory_space<any>> -> memref<1x16xf32, #tpu.memory_space<any>>
      %c0_i32_50 = arith.constant 0 : i32
      %c0_i32_51 = arith.constant 0 : i32
      %75 = tpu.memref_slice %arg7[%c0_i32_50, %c0_i32_51] : memref<8x16xf32, #tpu.memory_space<vmem>> -> memref<1x16xf32, #tpu.memory_space<vmem>>
      %76 = tpu.memref_slice %arg8[%c0_i32_48] : memref<8x!tpu.dma_semaphore, #tpu.memory_space<semaphore_mem>> -> memref<1x!tpu.dma_semaphore, #tpu.memory_space<semaphore_mem>>
      %77 = tpu.memref_squeeze %76 : memref<1x!tpu.dma_semaphore, #tpu.memory_space<semaphore_mem>> -> memref<!tpu.dma_semaphore, #tpu.memory_space<semaphore_mem>>
      tpu.wait_dma2 semaphore(%77 : memref<!tpu.dma_semaphore, #tpu.memory_space<semaphore_mem>>) src(%74 : memref<1x16xf32, #tpu.memory_space<any>>) dst(%75 : memref<1x16xf32, #tpu.memory_space<vmem>>)
      %c1_i32_52 = arith.constant 1 : i32
      %c0_i32_53 = arith.constant 0 : i32
      %78 = tpu.memref_slice %arg3[%21, %c0_i32_53] : memref<8x16xf32, #tpu.memory_space<any>> -> memref<1x16xf32, #tpu.memory_space<any>>
      %c1_i32_54 = arith.constant 1 : i32
      %c0_i32_55 = arith.constant 0 : i32
      %79 = tpu.memref_slice %arg7[%c1_i32_54, %c0_i32_55] : memref<8x16xf32, #tpu.memory_space<vmem>> -> memref<1x16xf32, #tpu.memory_space<vmem>>
      %80 = tpu.memref_slice %arg8[%c1_i32_52] : memref<8x!tpu.dma_semaphore, #tpu.memory_space<semaphore_mem>> -> memref<1x!tpu.dma_semaphore, #tpu.memory_space<semaphore_mem>>
      %81 = tpu.memref_squeeze %80 : memref<1x!tpu.dma_semaphore, #tpu.memory_space<semaphore_mem>> -> memref<!tpu.dma_semaphore, #tpu.memory_space<semaphore_mem>>
      tpu.wait_dma2 semaphore(%81 : memref<!tpu.dma_semaphore, #tpu.memory_space<semaphore_mem>>) src(%78 : memref<1x16xf32, #tpu.memory_space<any>>) dst(%79 : memref<1x16xf32, #tpu.memory_space<vmem>>)
      %c2_i32_56 = arith.constant 2 : i32
      %c0_i32_57 = arith.constant 0 : i32
      %82 = tpu.memref_slice %arg3[%29, %c0_i32_57] : memref<8x16xf32, #tpu.memory_space<any>> -> memref<1x16xf32, #tpu.memory_space<any>>
      %c2_i32_58 = arith.constant 2 : i32
      %c0_i32_59 = arith.constant 0 : i32
      %83 = tpu.memref_slice %arg7[%c2_i32_58, %c0_i32_59] : memref<8x16xf32, #tpu.memory_space<vmem>> -> memref<1x16xf32, #tpu.memory_space<vmem>>
      %84 = tpu.memref_slice %arg8[%c2_i32_56] : memref<8x!tpu.dma_semaphore, #tpu.memory_space<semaphore_mem>> -> memref<1x!tpu.dma_semaphore, #tpu.memory_space<semaphore_mem>>
      %85 = tpu.memref_squeeze %84 : memref<1x!tpu.dma_semaphore, #tpu.memory_space<semaphore_mem>> -> memref<!tpu.dma_semaphore, #tpu.memory_space<semaphore_mem>>
      tpu.wait_dma2 semaphore(%85 : memref<!tpu.dma_semaphore, #tpu.memory_space<semaphore_mem>>) src(%82 : memref<1x16xf32, #tpu.memory_space<any>>) dst(%83 : memref<1x16xf32, #tpu.memory_space<vmem>>)
      %c3_i32_60 = arith.constant 3 : i32
      %c0_i32_61 = arith.constant 0 : i32
      %86 = tpu.memref_slice %arg3[%37, %c0_i32_61] : memref<8x16xf32, #tpu.memory_space<any>> -> memref<1x16xf32, #tpu.memory_space<any>>
      %c3_i32_62 = arith.constant 3 : i32
      %c0_i32_63 = arith.constant 0 : i32
      %87 = tpu.memref_slice %arg7[%c3_i32_62, %c0_i32_63] : memref<8x16xf32, #tpu.memory_space<vmem>> -> memref<1x16xf32, #tpu.memory_space<vmem>>
      %88 = tpu.memref_slice %arg8[%c3_i32_60] : memref<8x!tpu.dma_semaphore, #tpu.memory_space<semaphore_mem>> -> memref<1x!tpu.dma_semaphore, #tpu.memory_space<semaphore_mem>>
      %89 = tpu.memref_squeeze %88 : memref<1x!tpu.dma_semaphore, #tpu.memory_space<semaphore_mem>> -> memref<!tpu.dma_semaphore, #tpu.memory_space<semaphore_mem>>
      tpu.wait_dma2 semaphore(%89 : memref<!tpu.dma_semaphore, #tpu.memory_space<semaphore_mem>>) src(%86 : memref<1x16xf32, #tpu.memory_space<any>>) dst(%87 : memref<1x16xf32, #tpu.memory_space<vmem>>)
      %c4_i32_64 = arith.constant 4 : i32
      %c0_i32_65 = arith.constant 0 : i32
      %90 = tpu.memref_slice %arg3[%45, %c0_i32_65] : memref<8x16xf32, #tpu.memory_space<any>> -> memref<1x16xf32, #tpu.memory_space<any>>
      %c4_i32_66 = arith.constant 4 : i32
      %c0_i32_67 = arith.constant 0 : i32
      %91 = tpu.memref_slice %arg7[%c4_i32_66, %c0_i32_67] : memref<8x16xf32, #tpu.memory_space<vmem>> -> memref<1x16xf32, #tpu.memory_space<vmem>>
      %92 = tpu.memref_slice %arg8[%c4_i32_64] : memref<8x!tpu.dma_semaphore, #tpu.memory_space<semaphore_mem>> -> memref<1x!tpu.dma_semaphore, #tpu.memory_space<semaphore_mem>>
      %93 = tpu.memref_squeeze %92 : memref<1x!tpu.dma_semaphore, #tpu.memory_space<semaphore_mem>> -> memref<!tpu.dma_semaphore, #tpu.memory_space<semaphore_mem>>
      tpu.wait_dma2 semaphore(%93 : memref<!tpu.dma_semaphore, #tpu.memory_space<semaphore_mem>>) src(%90 : memref<1x16xf32, #tpu.memory_space<any>>) dst(%91 : memref<1x16xf32, #tpu.memory_space<vmem>>)
      %c5_i32_68 = arith.constant 5 : i32
      %c0_i32_69 = arith.constant 0 : i32
      %94 = tpu.memref_slice %arg3[%53, %c0_i32_69] : memref<8x16xf32, #tpu.memory_space<any>> -> memref<1x16xf32, #tpu.memory_space<any>>
      %c5_i32_70 = arith.constant 5 : i32
      %c0_i32_71 = arith.constant 0 : i32
      %95 = tpu.memref_slice %arg7[%c5_i32_70, %c0_i32_71] : memref<8x16xf32, #tpu.memory_space<vmem>> -> memref<1x16xf32, #tpu.memory_space<vmem>>
      %96 = tpu.memref_slice %arg8[%c5_i32_68] : memref<8x!tpu.dma_semaphore, #tpu.memory_space<semaphore_mem>> -> memref<1x!tpu.dma_semaphore, #tpu.memory_space<semaphore_mem>>
      %97 = tpu.memref_squeeze %96 : memref<1x!tpu.dma_semaphore, #tpu.memory_space<semaphore_mem>> -> memref<!tpu.dma_semaphore, #tpu.memory_space<semaphore_mem>>
      tpu.wait_dma2 semaphore(%97 : memref<!tpu.dma_semaphore, #tpu.memory_space<semaphore_mem>>) src(%94 : memref<1x16xf32, #tpu.memory_space<any>>) dst(%95 : memref<1x16xf32, #tpu.memory_space<vmem>>)
      %c6_i32_72 = arith.constant 6 : i32
      %c0_i32_73 = arith.constant 0 : i32
      %98 = tpu.memref_slice %arg3[%61, %c0_i32_73] : memref<8x16xf32, #tpu.memory_space<any>> -> memref<1x16xf32, #tpu.memory_space<any>>
      %c6_i32_74 = arith.constant 6 : i32
      %c0_i32_75 = arith.constant 0 : i32
      %99 = tpu.memref_slice %arg7[%c6_i32_74, %c0_i32_75] : memref<8x16xf32, #tpu.memory_space<vmem>> -> memref<1x16xf32, #tpu.memory_space<vmem>>
      %100 = tpu.memref_slice %arg8[%c6_i32_72] : memref<8x!tpu.dma_semaphore, #tpu.memory_space<semaphore_mem>> -> memref<1x!tpu.dma_semaphore, #tpu.memory_space<semaphore_mem>>
      %101 = tpu.memref_squeeze %100 : memref<1x!tpu.dma_semaphore, #tpu.memory_space<semaphore_mem>> -> memref<!tpu.dma_semaphore, #tpu.memory_space<semaphore_mem>>
      tpu.wait_dma2 semaphore(%101 : memref<!tpu.dma_semaphore, #tpu.memory_space<semaphore_mem>>) src(%98 : memref<1x16xf32, #tpu.memory_space<any>>) dst(%99 : memref<1x16xf32, #tpu.memory_space<vmem>>)
      %c7_i32_76 = arith.constant 7 : i32
      %c0_i32_77 = arith.constant 0 : i32
      %102 = tpu.memref_slice %arg3[%69, %c0_i32_77] : memref<8x16xf32, #tpu.memory_space<any>> -> memref<1x16xf32, #tpu.memory_space<any>>
      %c7_i32_78 = arith.constant 7 : i32
      %c0_i32_79 = arith.constant 0 : i32
      %103 = tpu.memref_slice %arg7[%c7_i32_78, %c0_i32_79] : memref<8x16xf32, #tpu.memory_space<vmem>> -> memref<1x16xf32, #tpu.memory_space<vmem>>
      %104 = tpu.memref_slice %arg8[%c7_i32_76] : memref<8x!tpu.dma_semaphore, #tpu.memory_space<semaphore_mem>> -> memref<1x!tpu.dma_semaphore, #tpu.memory_space<semaphore_mem>>
      %105 = tpu.memref_squeeze %104 : memref<1x!tpu.dma_semaphore, #tpu.memory_space<semaphore_mem>> -> memref<!tpu.dma_semaphore, #tpu.memory_space<semaphore_mem>>
      tpu.wait_dma2 semaphore(%105 : memref<!tpu.dma_semaphore, #tpu.memory_space<semaphore_mem>>) src(%102 : memref<1x16xf32, #tpu.memory_space<any>>) dst(%103 : memref<1x16xf32, #tpu.memory_space<vmem>>)
    } else {
    }
    %c0 = arith.constant 0 : index
    %c0_1 = arith.constant 0 : index
    %3 = vector.load %arg7[%c0, %c0_1] : memref<8x16xf32, #tpu.memory_space<vmem>>, vector<8x16xf32>
    %c0_2 = arith.constant 0 : index
    %c0_3 = arith.constant 0 : index
    %4 = vector.load %arg4[%c0_2, %c0_3] : memref<128x16xf32, #tpu.memory_space<vmem>>, vector<128x16xf32>
    %cst = arith.constant dense<0.000000e+00> : vector<8x128xf32>
    %5 = tpu.matmul %3, %4, %cst {dimension_numbers = #tpu.dot_dimension_numbers<[1], [1], [0], [0], [0, 0, 1, 0], [], []>} : vector<8x16xf32>, vector<128x16xf32>, vector<8x128xf32> -> vector<8x128xf32>
    %c0_4 = arith.constant 0 : index
    %c0_5 = arith.constant 0 : index
    %6 = vector.load %arg5[%c0_4, %c0_5] : memref<1x128xf32, #tpu.memory_space<vmem>>, vector<1x128xf32>
    %7 = vector.broadcast %6 : vector<1x128xf32> to vector<8x128xf32>
    %8 = arith.addf %5, %7 : vector<8x128xf32>
    %c0_6 = arith.constant 0 : index
    %c0_7 = arith.constant 0 : index
    %9 = vector.load %arg6[%c0_6, %c0_7] : memref<8x128xf32, #tpu.memory_space<vmem>>, vector<8x128xf32>
    tpu.vector_store %arg6[%c0_6, %c0_7], %8 {strides = array<i32>} : memref<8x128xf32, #tpu.memory_space<vmem>>, vector<8x128xf32>,
    return
  }
  func.func @transform_1(%arg0: i32, %arg1: i32, %arg2: memref<8xi32, #tpu.memory_space<smem>>) -> (i32, i32) {
    %c0_i32 = arith.constant 0 : i32
    %c0_i32_0 = arith.constant 0 : i32
    return %arg1, %c0_i32 : i32, i32
  }
  func.func @transform_2(%arg0: i32, %arg1: i32, %arg2: memref<8xi32, #tpu.memory_space<smem>>) -> (i32, i32) {
    %c0_i32 = arith.constant 0 : i32
    %c0_i32_0 = arith.constant 0 : i32
    return %c0_i32, %arg1 : i32, i32
  }
  func.func @transform_3(%arg0: i32, %arg1: i32, %arg2: memref<8xi32, #tpu.memory_space<smem>>) -> (i32, i32) {
    %c0_i32 = arith.constant 0 : i32
    return %arg0, %arg1 : i32, i32
  }
}

</mosaic_0001>

<bundles_post_ra>
// kernel: tiny_transformer.1
= control target key start
LH: loop header
LB: loop body
LE: loop exit
PB: predicated region body
PF: predicated region fallthrough
CT: control target
= control target key end

     0   :  { %s1015_s0 = inlined_call_operand.vmem [shape: s32[8], index: 0, kind: input, shape index: {}]   ;;  %s1016_s1 = inlined_call_operand.vmem [shape: f32[8,16], index: 1, kind: input, shape index: {}]   ;;  %s1017_s2 = inlined_call_operand.vmem [shape: f32[128,16], index: 2, kind: input, shape index: {}]   ;;  %s1018_s3 = inlined_call_operand.vmem [shape: f32[1,128], index: 3, kind: input, shape index: {}]   ;;  %s1019_s4 = inlined_call_operand.vmem [shape: f32[8,128], index: 4, kind: output, shape index: {}]  }
   0x1   :  { %s9_s17 = sshll.u32 %s1015_s0, 4  ;;  %s10_s17 = int_to_ptr.vmem [resolvable:$true] %s9_s17 }
   0x2   :  { %s852_s18 = scalar_lea.vmem %s10_s17, 16  ;;  %p857_p1 = scmp.lt.s32.totalorder %s10_s17, %s10_s17 }
   0x3   :  { %p853_p0 = scmp.ne.s32.totalorder %s10_s17, %s852_s18  ;;  %p858_p2 = scmp.lt.s32.totalorder %s852_s18, %s852_s18 }
   0x5   :  { %p859_p3 = por %p858_p2, %p857_p1 }
   0x7   :  { %p860_p4 = pnand %p859_p3, %p853_p0 }
   0x9   :  { %863 = shalt.err (!%p860_p4)  }
   0xa   :  { %s882_s19 = smov [#allocation5]  }
   0xb   :  { %12 = dma.vmem_to_smem %s10_s17, 16, %s882_s19, [#allocation4] }
   0xc   :  { %864 = dma.done.wait [#allocation4], 16 }
   0xd   :  { %865 = vsyncadd [#allocation4], 4294967280 }
   0xe   :  { %14 = sfence }
   0xf   :  { %s24_s20 = sld [smem:[#allocation5]] }
  0x15   :  { %s25_s23 = scalar_lea.vmem %s1016_s1, %s24_s20 }
  0x16   :  { %v43_v0 = vld [vmem:[%s25_s23] sm:$0x1] }
  0x17   :  { %44 = vst [vmem:[#allocation2] sm:$0x1] %v43_v0 }
  0x18   :  { %69 = vsyncadd [#allocation3], 16  ;;  %s731_s0 = sld [smem:[#allocation5 + $0x1]] }
  0x1e   :  { %s72_s26 = scalar_lea.vmem %s1016_s1, %s731_s0 }
  0x1f   :  { %v92_v1 = vld [vmem:[%s72_s26] sm:$0x1] }
  0x20   :  { %93 = vst [vmem:[#allocation2 + $0x1] sm:$0x1] %v92_v1 }
  0x21   :  { %118 = vsyncadd [#allocation3 + $0x1], 16  ;;  %s732_s27 = sld [smem:[#allocation5 + $0x2]] }
  0x27   :  { %s121_s30 = scalar_lea.vmem %s1016_s1, %s732_s27 }
  0x28   :  { %v141_v2 = vld [vmem:[%s121_s30] sm:$0x1] }
  0x29   :  { %142 = vst [vmem:[#allocation2 + $0x2] sm:$0x1] %v141_v2 }
  0x2a   :  { %167 = vsyncadd [#allocation3 + $0x2], 16  ;;  %s733_s5 = sld [smem:[#allocation5 + $0x3]] }
  0x30   :  { %s170_s8 = scalar_lea.vmem %s1016_s1, %s733_s5 }
  0x31   :  { %v190_v3 = vld [vmem:[%s170_s8] sm:$0x1] }
  0x32   :  { %191 = vst [vmem:[#allocation2 + $0x3] sm:$0x1] %v190_v3 }
  0x33   :  { %216 = vsyncadd [#allocation3 + $0x3], 16  ;;  %s734_s9 = sld [smem:[#allocation5 + $0x4]] }
  0x39   :  { %s219_s12 = scalar_lea.vmem %s1016_s1, %s734_s9 }
  0x3a   :  { %v239_v4 = vld [vmem:[%s219_s12] sm:$0x1] }
  0x3b   :  { %240 = vst [vmem:[#allocation2 + $0x4] sm:$0x1] %v239_v4 }
  0x3c   :  { %265 = vsyncadd [#allocation3 + $0x4], 16  ;;  %s735_s13 = sld [smem:[#allocation5 + $0x5]] }
  0x42   :  { %s268_s16 = scalar_lea.vmem %s1016_s1, %s735_s13 }
  0x43   :  { %v288_v5 = vld [vmem:[%s268_s16] sm:$0x1] }
  0x44   :  { %289 = vst [vmem:[#allocation2 + $0x5] sm:$0x1] %v288_v5 }
  0x45   :  { %314 = vsyncadd [#allocation3 + $0x5], 16  ;;  %s736_s17 = sld [smem:[#allocation5 + $0x6]] }
  0x4b   :  { %s317_s20 = scalar_lea.vmem %s1016_s1, %s736_s17 }
  0x4c   :  { %v337_v6 = vld [vmem:[%s317_s20] sm:$0x1] }
  0x4d   :  { %338 = vst [vmem:[#allocation2 + $0x6] sm:$0x1] %v337_v6 }
  0x4e   :  { %363 = vsyncadd [#allocation3 + $0x6], 16  ;;  %s737_s21 = sld [smem:[#allocation5 + $0x7]] }
  0x54   :  { %s366_s0 = scalar_lea.vmem %s1016_s1, %s737_s21 }
  0x55   :  { %v386_v7 = vld [vmem:[%s366_s0] sm:$0x1] }
  0x56   :  { %387 = vst [vmem:[#allocation2 + $0x7] sm:$0x1] %v386_v7 }
  0x57   :  { %412 = vsyncadd [#allocation3 + $0x7], 16 }
  0x58   :  { %866 = dma.done.wait [#allocation3], 16 }
  0x59   :  { %867 = vsyncadd [#allocation3], 4294967280 }
  0x5a   :  { %868 = dma.done.wait [#allocation3 + $0x1], 16 }
  0x5b   :  { %869 = vsyncadd [#allocation3 + $0x1], 4294967280 }
  0x5c   :  { %870 = dma.done.wait [#allocation3 + $0x2], 16 }
  0x5d   :  { %871 = vsyncadd [#allocation3 + $0x2], 4294967280 }
  0x5e   :  { %872 = dma.done.wait [#allocation3 + $0x3], 16 }
  0x5f   :  { %873 = vsyncadd [#allocation3 + $0x3], 4294967280 }
  0x60   :  { %874 = dma.done.wait [#allocation3 + $0x4], 16 }
  0x61   :  { %875 = vsyncadd [#allocation3 + $0x4], 4294967280 }
  0x62   :  { %876 = dma.done.wait [#allocation3 + $0x5], 16 }
  0x63   :  { %877 = vsyncadd [#allocation3 + $0x5], 4294967280 }
  0x64   :  { %878 = dma.done.wait [#allocation3 + $0x6], 16 }
  0x65   :  { %879 = vsyncadd [#allocation3 + $0x6], 4294967280 }
  0x66   :  { %880 = dma.done.wait [#allocation3 + $0x7], 16 }
  0x67   :  { %881 = vsyncadd [#allocation3 + $0x7], 4294967280  ;;  %v883_v8 = vmov 0.0|0.0   ;;  %vm884_vm0 = vmmov 0   ;;  %v885_v9 = vmov 0.0   ;;  %vm454_vm1 = vcmask 130048  }
  0x68   :  { %816 = vmatprep.subr.bf16.mxu0 %v883_v8  ;;  %813 = vmatprep.mubr.msk.f32.mxu0 %vm884_vm0, %v885_v9  ;;  %v431_v10 = vld [vmem:[%s1017_s2] sm:$0xff]  ;;  %v432_v11 = vld [vmem:[%s1017_s2 + $0x8] sm:$0xff]  ;;  %vm946_vm2 = vmpackc.low %vm454_vm1, %vm454_vm1 }
  0x69   :  { %v817_v13 = vpack.c.bf16 %v432_v11, %v431_v10  ;;  %v433_v14 = vld [vmem:[%s1017_s2 + $0x10] sm:$0xff]  ;;  %v434_v15 = vld [vmem:[%s1017_s2 + $0x18] sm:$0xff]  ;;  %v435_v17 = vld [vmem:[%s1017_s2 + $0x20] sm:$0xff] }
  0x6a   :  { %v821_v16 = vpack.c.bf16 %v434_v15, %v433_v14  ;;  %v436_v18 = vld [vmem:[%s1017_s2 + $0x28] sm:$0xff]  ;;  %v437_v20 = vld [vmem:[%s1017_s2 + $0x30] sm:$0xff]  ;;  %v438_v21 = vld [vmem:[%s1017_s2 + $0x38] sm:$0xff] }
  0x6b   :  { %819 = vmatpush3.bf16.xpose.msk.msra.mxu0 %vm946_vm2, %v817_v13  ;;  %v825_v19 = vpack.c.bf16 %v436_v18, %v435_v17  ;;  %v829_v22 = vpack.c.bf16 %v438_v21, %v437_v20  ;;  %v439_v23 = vld [vmem:[%s1017_s2 + $0x40] sm:$0xff]  ;;  %v440_v24 = vld [vmem:[%s1017_s2 + $0x48] sm:$0xff]  ;;  %v441_v26 = vld [vmem:[%s1017_s2 + $0x50] sm:$0xff] }
  0x6c   :  { %820 = vmatprep.subr.bf16.mxu0 %v883_v8  ;;  %v833_v25 = vpack.c.bf16 %v440_v24, %v439_v23  ;;  %v442_v27 = vld [vmem:[%s1017_s2 + $0x58] sm:$0xff]  ;;  %v443_v29 = vld [vmem:[%s1017_s2 + $0x60] sm:$0xff]  ;;  %v444_v30 = vld [vmem:[%s1017_s2 + $0x68] sm:$0xff] }
  0x6d   :  { %v837_v28 = vpack.c.bf16 %v442_v27, %v441_v26  ;;  %v841_v31 = vpack.c.bf16 %v444_v30, %v443_v29  ;;  %v445_v32 = vld [vmem:[%s1017_s2 + $0x70] sm:$0xff]  ;;  %v446_v33 = vld [vmem:[%s1017_s2 + $0x78] sm:$0xff]  ;;  %v430_v35 = vld [vmem:[#allocation2] sm:$0xff] }
  0x6e   :  { %v845_v34 = vpack.c.bf16 %v446_v33, %v445_v32  ;;  %v738_v36 = vld [vmem:[%s1018_s3] ss:$0 sm:$0xff] }
  0x73   :  { %823 = vmatpush3.bf16.xpose.msk.msra.mxu0 %vm946_vm2, %v821_v16 }
  0x74   :  { %824 = vmatprep.subr.bf16.mxu0 %v883_v8 }
  0x7b   :  { %827 = vmatpush3.bf16.xpose.msk.msra.mxu0 %vm946_vm2, %v825_v19 }
  0x7c   :  { %828 = vmatprep.subr.bf16.mxu0 %v883_v8 }
  0x83   :  { %831 = vmatpush3.bf16.xpose.msk.msra.mxu0 %vm946_vm2, %v829_v22 }
  0x84   :  { %832 = vmatprep.subr.bf16.mxu0 %v883_v8 }
  0x8b   :  { %835 = vmatpush3.bf16.xpose.msk.msra.mxu0 %vm946_vm2, %v833_v25 }
  0x8c   :  { %836 = vmatprep.subr.bf16.mxu0 %v883_v8 }
  0x93   :  { %839 = vmatpush3.bf16.xpose.msk.msra.mxu0 %vm946_vm2, %v837_v28 }
  0x94   :  { %840 = vmatprep.subr.bf16.mxu0 %v883_v8 }
  0x9b   :  { %843 = vmatpush3.bf16.xpose.msk.msra.mxu0 %vm946_vm2, %v841_v31 }
  0x9c   :  { %844 = vmatprep.subr.bf16.mxu0 %v883_v8 }
  0xa3   :  { %847 = vmatpush3.bf16.xpose.msk.msra.mxu0 %vm946_vm2, %v845_v34 }
  0xaa   :  { %814 = vmatmul.mubr.msk.f32.vlgmr.msra.gmra.mrb[0].mxu0 %vm454_vm1, %v430_v35 }
 0x17d   :  { %v572_v37 = vpop.f32.mrb[0].mxu0 }
 0x17e   :  { %v573_v38 = vadd.f32 %v738_v36, %v572_v37  ;;  %v815_v39 = vpop.f32.mrb[1].mxu0 }
 0x180   :  { %576 = vst [vmem:[%s1019_s4] sm:$0xff] %v573_v38 }
 0x181   :  { %581 = vsyncmov [#allocation3] }
 0x184   :  { %s582_s2 = vpop.sfrf %581 }
 0x185   :  { %p756_p5 = scmp.ne.s32.totalorder %s582_s2, 0 }
 0x187   :  { %586 = shalt.err (%p756_p5)  }
 0x188   :  { %588 = vsyncmov [#allocation3 + $0x1] }
 0x18b   :  { %s589_s5 = vpop.sfrf %588 }
 0x18c   :  { %p757_p6 = scmp.ne.s32.totalorder %s589_s5, 0 }
 0x18e   :  { %593 = shalt.err (%p757_p6)  }
 0x18f   :  { %595 = vsyncmov [#allocation3 + $0x2] }
 0x192   :  { %s596_s6 = vpop.sfrf %595 }
 0x193   :  { %p758_p7 = scmp.ne.s32.totalorder %s596_s6, 0 }
 0x195   :  { %600 = shalt.err (%p758_p7)  }
 0x196   :  { %602 = vsyncmov [#allocation3 + $0x3] }
 0x199   :  { %s603_s3 = vpop.sfrf %602 }
 0x19a   :  { %p759_p8 = scmp.ne.s32.totalorder %s603_s3, 0 }
 0x19c   :  { %607 = shalt.err (%p759_p8)  }
 0x19d   :  { %609 = vsyncmov [#allocation3 + $0x4] }
 0x1a0   :  { %s610_s7 = vpop.sfrf %609 }
 0x1a1   :  { %p760_p9 = scmp.ne.s32.totalorder %s610_s7, 0 }
 0x1a3   :  { %614 = shalt.err (%p760_p9)  }
 0x1a4   :  { %616 = vsyncmov [#allocation3 + $0x5] }
 0x1a7   :  { %s617_s4 = vpop.sfrf %616 }
 0x1a8   :  { %p761_p10 = scmp.ne.s32.totalorder %s617_s4, 0 }
 0x1aa   :  { %621 = shalt.err (%p761_p10)  }
 0x1ab   :  { %623 = vsyncmov [#allocation3 + $0x6] }
 0x1ae   :  { %s624_s8 = vpop.sfrf %623 }
 0x1af   :  { %p762_p11 = scmp.ne.s32.totalorder %s624_s8, 0 }
 0x1b1   :  { %628 = shalt.err (%p762_p11)  }
 0x1b2   :  { %630 = vsyncmov [#allocation3 + $0x7] }
 0x1b5   :  { %s631_s9 = vpop.sfrf %630 }
 0x1b6   :  { %p763_p12 = scmp.ne.s32.totalorder %s631_s9, 0 }
 0x1b8   :  { %635 = shalt.err (%p763_p12)  }

</bundles_post_ra>
